<compile_context>
chip_gen: v7x
topology: tpu7x:2x2x1
jax: 0.10.0
libtpu: 0.0.40
codegen_flags: <defaults>
</compile_context>

<pallas_src>
import math
import functools

import jax
import jax.numpy as jnp
from jax import lax
from jax.experimental import pallas as pl
from jax.experimental.pallas import tpu as pltpu


def _round_up(v: int, m: int) -> int:
    return ((v + m - 1) // m) * m


def _cdiv(a: int, b: int) -> int:
    return (a + b - 1) // b


def _sublane_multiple(dtype) -> int:
    # 8 for 32-bit, 16 for 16-bit, 32 for 8-bit dtypes.
    return 8 * (4 // jnp.dtype(dtype).itemsize)


# ---------------------------------------------------------------------------
# Pallas kernel: one (k-block, C-tile, N-tile) step of
#     out[kb, cb] += P @ x[nb, cb],   P = one_hot(perm[kb])   (MXU)
# with the tanh(score)*multiplier scale folded into the last N step.
# ---------------------------------------------------------------------------
def _sag_pool_kernel(perm_ref, score_ref, x_ref, out_ref, *,
                     tile_n: int, n_valid: int, ragged_n: bool,
                     multiplier: float):
    # perm_ref : VMEM int32 (block_k, 1)       kept-node indices (padding = -1)
    # score_ref: VMEM f32   (block_k, 1)       raw scores of kept nodes (pad=0)
    # x_ref    : VMEM       (tile_n, tile_c)   tile of the node-feature matrix
    # out_ref  : VMEM       (block_k, tile_c)  pooled features, accumulated
    #                                          across the N (reduction) axis
    nb = pl.program_id(2)

    @pl.when(nb == 0)
    def _init():
        out_ref[...] = jnp.zeros_like(out_ref)

    block_k = out_ref.shape[0]
    # Static iota (hoisted out of the grid loop); only the (block_k,1) target
    # is shifted per step.  Padded perm entries (-1) never match a
    # non-negative iota column -> all-zero rows -> zero output rows.
    col = lax.broadcasted_iota(jnp.int32, (block_k, tile_n), 1)
    tgt = perm_ref[...] - nb * tile_n                     # (block_k, 1)
    onehot = (col == tgt).astype(x_ref.dtype)

    x_tile = x_ref[...]
    if ragged_n:
        # The last N tile extends past N; its stale rows could hold NaN/Inf
        # garbage and 0*NaN = NaN would poison the matmul, so zero them.
        row = lax.broadcasted_iota(jnp.int32, (tile_n, 1), 0) + nb * tile_n
        x_tile = jnp.where(row < n_valid, x_tile, jnp.zeros_like(x_tile))

    # Direct accumulation into out_ref is exact: each output row gets exactly
    # one nonzero contribution (the N tile containing perm[i]); all other
    # steps add exact zeros.
    contrib = jnp.dot(onehot, x_tile, preferred_element_type=jnp.float32)
    out_ref[...] += contrib.astype(out_ref.dtype)

    @pl.when(nb == pl.num_programs(2) - 1)
    def _finalize():
        scale = jnp.tanh(score_ref[...])                  # (block_k, 1), EUP
        if multiplier != 1.0:
            scale = scale * multiplier
        out_ref[...] = (out_ref[...].astype(jnp.float32) * scale
                        ).astype(out_ref.dtype)


def sag_pool_gather(x, score, perm, *, multiplier: float = 1.0,
                    block_k_max: int = 256, tile_n_max: int = 512,
                    tile_c_max: int = 512, x_buffers=None):
    """x: (N, C), score: (N,) f32, perm: (k,) int32 -> ((k, C), (k,) f32)."""
    N, C = x.shape
    k = int(perm.shape[0])
    sub = _sublane_multiple(x.dtype)

    # k tiling (parallel axis): block_k rows per grid step, padded with -1.
    block_k = min(block_k_max, _round_up(max(k, sub), sub))
    k_pad = _round_up(max(k, block_k), block_k)
    k_blocks = k_pad // block_k

    # N tiling (reduction axis).  x itself is NOT padded/copied; ragged edge
    # tiles are masked inside the kernel.
    tile_n = min(tile_n_max, _round_up(max(N, sub), sub))
    n_blocks = _cdiv(N, tile_n)
    ragged_n = (N % tile_n) != 0

    # C tiling (parallel axis), cdiv grid -> no heavy C padding of x.
    tile_c = min(tile_c_max, _round_up(max(C, 128), 128))
    c_blocks = _cdiv(C, tile_c)
    C_pad = c_blocks * tile_c            # only the (small) output is padded

    perm_p = jnp.full((k_pad, 1), -1, jnp.int32).at[:k, 0].set(
        perm.astype(jnp.int32))
    score_sel = jnp.zeros((k_pad, 1), jnp.float32).at[:k, 0].set(
        score.astype(jnp.float32)[perm])

    # VMEM budget from the actual footprint (double-buffered tiles) + margin.
    itemsize = jnp.dtype(x.dtype).itemsize
    x_tile_b = tile_n * tile_c * itemsize
    out_blk_b = block_k * tile_c * itemsize
    small_b = 4 * block_k * 4                        # perm + score blocks (x2)
    footprint = 2 * x_tile_b + 2 * out_blk_b + small_b
    vmem_limit = int(min(max(4 * footprint, 16 << 20), 32 << 20))

    if x_buffers is None:
        x_spec = pl.BlockSpec((tile_n, tile_c), lambda kb, cb, nb: (nb, cb))
    else:   # e.g. 3 on v5e if the x DMA is exposed
        x_spec = pl.BlockSpec((tile_n, tile_c), lambda kb, cb, nb: (nb, cb),
                              pipeline_mode=pl.Buffered(x_buffers))

    kernel = functools.partial(_sag_pool_kernel, tile_n=tile_n, n_valid=N,
                               ragged_n=ragged_n, multiplier=float(multiplier))
    grid = (k_blocks, c_blocks, n_blocks)     # (parallel, parallel, reduction)

    out = pl.pallas_call(
        kernel,
        out_shape=jax.ShapeDtypeStruct((k_pad, C_pad), x.dtype),
        grid_spec=pltpu.PrefetchScalarGridSpec(
            num_scalar_prefetch=0,
            grid=grid,
            in_specs=[
                pl.BlockSpec((block_k, 1), lambda kb, cb, nb: (kb, 0)),  # perm
                pl.BlockSpec((block_k, 1), lambda kb, cb, nb: (kb, 0)),  # score
                x_spec,                                                  # x
            ],
            out_specs=pl.BlockSpec((block_k, tile_c),
                                   lambda kb, cb, nb: (kb, cb)),
        ),
        compiler_params=pltpu.CompilerParams(
            dimension_semantics=("parallel", "parallel", "arbitrary"),
            vmem_limit_bytes=vmem_limit),
    )(perm_p, score_sel, x)

    x_pooled = out[:k, :C]
    # Pooled score vector is k floats; computed in plain JAX (lane-width-1
    # kernel output would be all masked stores for no benefit).
    score_pooled = jnp.tanh(score.astype(jnp.float32))[perm]
    return x_pooled, score_pooled


# ---------------------------------------------------------------------------
# Plain-JAX glue reproducing the rest of SAGPooling.forward (min_score=None,
# single graph / batch all-zeros, multiplier configurable).
# ---------------------------------------------------------------------------
def filter_adj(edge_index, edge_attr, node_index, num_nodes, edge_lengths=None):
    # TODO(synk): data-dependent output length (boolean edge compaction) has no
    # clean Pallas equivalent; done eagerly in plain JAX like the torch code.
    cluster_index = jnp.arange(node_index.shape[0], dtype=jnp.int32)
    mask = jnp.full((num_nodes,), -1, dtype=jnp.int32)
    mask = mask.at[node_index].set(cluster_index)
    row, col = edge_index[0], edge_index[1]
    row, col = mask[row], mask[col]
    emask = (row >= 0) & (col >= 0)
    row, col = row[emask], col[emask]
    if edge_attr is not None:
        edge_attr = edge_attr[emask]
    if edge_lengths is not None:
        edge_lengths = edge_lengths[emask]
    return jnp.stack([row, col], axis=0), edge_attr, edge_lengths


def sag_pooling_forward(x, score, edge_index, edge_attr, node_type,
                        batch=None, edge_lengths=None,
                        *, ratio=0.5, multiplier=1.0):
    N = x.shape[0]
    if batch is None:
        batch = jnp.zeros((N,), dtype=jnp.int32)

    # top-k selection on tanh(score) — same ranking (and tie behavior) as the
    # torch module, which applies the nonlinearity before topk.
    score_t = jnp.tanh(score.astype(jnp.float32))
    k = int(math.ceil(ratio * N)) if isinstance(ratio, float) else int(ratio)
    _, perm = lax.top_k(score_t, k)
    perm = perm.astype(jnp.int32)

    # hot path in Pallas: one-hot-matmul gather + tanh + multiplier scale
    x_pooled, score_pooled = sag_pool_gather(x, score, perm,
                                             multiplier=multiplier)

    batch_pooled = batch[perm]
    node_type_pooled = node_type[perm]
    edge_index_pp, edge_attr_pp, new_edge_lengths = filter_adj(
        edge_index, edge_attr, perm, num_nodes=N, edge_lengths=edge_lengths)

    return (x_pooled, edge_index_pp, edge_attr_pp, node_type_pooled,
            batch_pooled, perm, score_pooled, new_edge_lengths)


# ---------------------------------------------------------------------------
if __name__ == "__main__":
    key = jax.random.PRNGKey(0)
    k1, k2, k3, k4, k5, k6 = jax.random.split(key, 6)

    # Small graph: 50 nodes (ragged N tile), 160 channels (2 C tiles, ragged
    # edge C tile), 64 edges.
    N, C, E = 50, 160, 64
    ratio, multiplier = 0.5, 1.0

    x = jax.random.normal(k1, (N, C), dtype=jnp.float32)
    score = jax.random.normal(k2, (N,), dtype=jnp.float32)
    edge_index = jax.random.randint(k3, (2, E), 0, N, dtype=jnp.int32)
    edge_attr = jax.random.normal(k4, (E, 3), dtype=jnp.float32)
    node_type = jax.random.randint(k5, (N,), 0, 4, dtype=jnp.int32)
    edge_lengths = jax.random.uniform(k6, (E,), dtype=jnp.float32)
    batch = jnp.zeros((N,), dtype=jnp.int32)

    outs = sag_pooling_forward(x, score, edge_index, edge_attr, node_type,
                               batch, edge_lengths,
                               ratio=ratio, multiplier=multiplier)
    (x_p, ei_p, ea_p, nt_p, b_p, perm, score_p, el_p) = outs
    jax.block_until_ready(x_p)
    jax.block_until_ready(score_p)

    # reference check against plain JAX semantics of the torch module
    s_ref = jnp.tanh(score)
    k_keep = int(math.ceil(ratio * N))
    _, perm_ref = lax.top_k(s_ref, k_keep)
    x_ref = x[perm_ref] * s_ref[perm_ref][:, None]
    if multiplier != 1.0:
        x_ref = multiplier * x_ref
    assert jnp.allclose(x_p, x_ref, atol=1e-5, rtol=1e-5), "x mismatch"
    assert jnp.allclose(score_p, s_ref[perm_ref], atol=1e-6), "score mismatch"
    assert jnp.array_equal(perm, perm_ref.astype(jnp.int32)), "perm mismatch"
    assert jnp.array_equal(nt_p, node_type[perm_ref]), "node_type mismatch"
    assert jnp.array_equal(b_p, batch[perm_ref]), "batch mismatch"

    print("KERNEL_OK")
</pallas_src>

<mosaic_0001>
module attributes {stable_mosaic.version = 11 : i64} {
  func.func @_sag_pool_kernel(%arg0: i32, %arg1: i32, %arg2: i32, %arg3: memref<32x1xi32, #tpu.memory_space<vmem>>, %arg4: memref<32x1xf32, #tpu.memory_space<vmem>>, %arg5: memref<56x256xf32, #tpu.memory_space<vmem>>, %arg6: memref<32x256xf32, #tpu.memory_space<vmem>>) attributes {dimension_semantics = [#tpu.dimension_semantics<parallel>, #tpu.dimension_semantics<parallel>, #tpu.dimension_semantics<arbitrary>], iteration_bounds = array<i64: 1, 1, 1>, scalar_prefetch = 0 : i64, scratch_operands = 0 : i64, tpu.core_type = #tpu.core_type<tc>, window_params = [{transform_indices = @transform_0, window_bounds = array<i64: 32, 1>}, {transform_indices = @transform_1, window_bounds = array<i64: 32, 1>}, {transform_indices = @transform_2, window_bounds = array<i64: 56, 256>}, {transform_indices = @transform_3, window_bounds = array<i64: 32, 256>}]} {
    %c0_i32 = arith.constant 0 : i32
    %0 = arith.cmpi eq, %arg2, %c0_i32 : i32
    %1 = arith.extui %0 : i1 to i32
    %c0_i32_0 = arith.constant 0 : i32
    %2 = arith.cmpi ne, %1, %c0_i32_0 : i32
    scf.if %2 {
      %cst_12 = arith.constant 0.000000e+00 : f32
      %30 = vector.broadcast %cst_12 : f32 to vector<32x256xf32>
      %c0_13 = arith.constant 0 : index
      %c0_14 = arith.constant 0 : index
      %31 = vector.load %arg6[%c0_13, %c0_14] : memref<32x256xf32, #tpu.memory_space<vmem>>, vector<32x256xf32>
      tpu.vector_store %arg6[%c0_13, %c0_14], %30 {strides = array<i32>} : memref<32x256xf32, #tpu.memory_space<vmem>>, vector<32x256xf32>,
    } else {
    }
    %3 = tpu.iota {dimensions = array<i32: 1>} : vector<32x56xi32>
    %c0 = arith.constant 0 : index
    %c0_1 = arith.constant 0 : index
    %4 = vector.load %arg3[%c0, %c0_1] : memref<32x1xi32, #tpu.memory_space<vmem>>, vector<32x1xi32>
    %c56_i32 = arith.constant 56 : i32
    %5 = arith.muli %arg2, %c56_i32 : i32
    %6 = vector.broadcast %5 : i32 to vector<32x1xi32>
    %7 = arith.subi %4, %6 : vector<32x1xi32>
    %8 = vector.broadcast %7 : vector<32x1xi32> to vector<32x56xi32>
    %9 = arith.cmpi eq, %3, %8 : vector<32x56xi32>
    %10 = arith.extui %9 : vector<32x56xi1> to vector<32x56xi32>
    %11 = arith.sitofp %10 : vector<32x56xi32> to vector<32x56xf32>
    %c0_2 = arith.constant 0 : index
    %c0_3 = arith.constant 0 : index
    %12 = vector.load %arg5[%c0_2, %c0_3] : memref<56x256xf32, #tpu.memory_space<vmem>>, vector<56x256xf32>
    %13 = tpu.iota {dimensions = array<i32: 0>} : vector<56x1xi32>
    %c56_i32_4 = arith.constant 56 : i32
    %14 = arith.muli %arg2, %c56_i32_4 : i32
    %15 = vector.broadcast %14 : i32 to vector<56x1xi32>
    %16 = arith.addi %13, %15 : vector<56x1xi32>
    %c50_i32 = arith.constant 50 : i32
    %17 = vector.broadcast %c50_i32 : i32 to vector<56x1xi32>
    %18 = arith.cmpi slt, %16, %17 : vector<56x1xi32>
    %cst = arith.constant 0.000000e+00 : f32
    %19 = vector.broadcast %cst : f32 to vector<56x256xf32>
    %20 = vector.shape_cast %18 : vector<56x1xi1> to vector<56x1xi1>
    %21 = vector.broadcast %20 : vector<56x1xi1> to vector<56x256xi1>
    %22 = arith.select %21, %12, %19 : vector<56x256xi1>, vector<56x256xf32>
    %cst_5 = arith.constant dense<0.000000e+00> : vector<32x256xf32>
    %23 = tpu.matmul %11, %22, %cst_5 {dimension_numbers = #tpu.dot_dimension_numbers<[1], [0], [0], [1], [0, 0, 1, 1], [], []>} : vector<32x56xf32>, vector<56x256xf32>, vector<32x256xf32> -> vector<32x256xf32>
    %c0_6 = arith.constant 0 : index
    %c0_7 = arith.constant 0 : index
    %24 = vector.load %arg6[%c0_6, %c0_7] : memref<32x256xf32, #tpu.memory_space<vmem>>, vector<32x256xf32>
    %25 = arith.addf %24, %23 : vector<32x256xf32>
    %c0_8 = arith.constant 0 : index
    %c0_9 = arith.constant 0 : index
    %26 = vector.load %arg6[%c0_8, %c0_9] : memref<32x256xf32, #tpu.memory_space<vmem>>, vector<32x256xf32>
    tpu.vector_store %arg6[%c0_8, %c0_9], %25 {strides = array<i32>} : memref<32x256xf32, #tpu.memory_space<vmem>>, vector<32x256xf32>,
    %c0_i32_10 = arith.constant 0 : i32
    %27 = arith.cmpi eq, %arg2, %c0_i32_10 : i32
    %28 = arith.extui %27 : i1 to i32
    %c0_i32_11 = arith.constant 0 : i32
    %29 = arith.cmpi ne, %28, %c0_i32_11 : i32
    scf.if %29 {
      %c0_12 = arith.constant 0 : index
      %c0_13 = arith.constant 0 : index
      %30 = vector.load %arg4[%c0_12, %c0_13] : memref<32x1xf32, #tpu.memory_space<vmem>>, vector<32x1xf32>
      %31 = math.tanh %30 : vector<32x1xf32>
      %c0_14 = arith.constant 0 : index
      %c0_15 = arith.constant 0 : index
      %32 = vector.load %arg6[%c0_14, %c0_15] : memref<32x256xf32, #tpu.memory_space<vmem>>, vector<32x256xf32>
      %33 = vector.broadcast %31 : vector<32x1xf32> to vector<32x256xf32>
      %34 = arith.mulf %32, %33 : vector<32x256xf32>
      %c0_16 = arith.constant 0 : index
      %c0_17 = arith.constant 0 : index
      %35 = vector.load %arg6[%c0_16, %c0_17] : memref<32x256xf32, #tpu.memory_space<vmem>>, vector<32x256xf32>
      tpu.vector_store %arg6[%c0_16, %c0_17], %34 {strides = array<i32>} : memref<32x256xf32, #tpu.memory_space<vmem>>, vector<32x256xf32>,
    } else {
    }
    return
  }
  func.func @transform_0(%arg0: i32, %arg1: i32, %arg2: i32) -> (i32, i32) {
    %c0_i32 = arith.constant 0 : i32
    %c0_i32_0 = arith.constant 0 : i32
    return %arg0, %c0_i32 : i32, i32
  }
  func.func @transform_1(%arg0: i32, %arg1: i32, %arg2: i32) -> (i32, i32) {
    %c0_i32 = arith.constant 0 : i32
    %c0_i32_0 = arith.constant 0 : i32
    return %arg0, %c0_i32 : i32, i32
  }
  func.func @transform_2(%arg0: i32, %arg1: i32, %arg2: i32) -> (i32, i32) {
    %c0_i32 = arith.constant 0 : i32
    return %arg2, %arg1 : i32, i32
  }
  func.func @transform_3(%arg0: i32, %arg1: i32, %arg2: i32) -> (i32, i32) {
    %c0_i32 = arith.constant 0 : i32
    return %arg0, %arg1 : i32, i32
  }
}

</mosaic_0001>

<bundles_post_ra>
// kernel: tpu_custom_call.1
= control target key start
LH: loop header
LB: loop body
LE: loop exit
PB: predicated region body
PF: predicated region fallthrough
CT: control target
= control target key end

     0   :  { %8 = vsyncpa [#allocation3], 0  ;;  %s525_s0 = inlined_call_operand.vmem [shape: s32[32,1], index: 0, kind: input, shape index: {}]   ;;  %s526_s1 = inlined_call_operand.vmem [shape: f32[32,1], index: 1, kind: input, shape index: {}]   ;;  %s527_s2 = inlined_call_operand.hbm [shape: f32[50,160], index: 2, kind: input, shape index: {}]   ;;  %s528_s3 = inlined_call_operand.hbm [shape: f32[32,256], index: 3, kind: output, shape index: {}]  }
   0x1   :  { %9 = vsyncpa [#allocation4], 0  ;;  %s433_s12 = smov [#allocation2]   ;;  %s385_s16 = scalar_lea.hbm %s527_s2, 1792 }
   0x2   :  { %s19_s13 = sshll.u32 %s433_s12, 4  ;;  %p386_p0 = scmp.ne.s32.totalorder %s527_s2, %s385_s16  ;;  %s20_s13 = int_to_ptr.vmem [resolvable:$true] %s19_s13 }
   0x3   :  { %p389_p1 = scmp.lt.u32.totalorder %s385_s16, %s527_s2 }
   0x5   :  { %p391_p2 = pnand %p389_p1, %p386_p0 }
   0x7   :  { %394 = shalt.err (!%p391_p2)
}
   0x8   :  { %s395_s21 = scalar_lea.vmem %s20_s13, 1792  ;;  %p400_p4 = scmp.lt.s32.totalorder %s20_s13, %s20_s13 }
   0x9   :  { %p396_p3 = scmp.ne.s32.totalorder %s20_s13, %s395_s21  ;;  %p401_p5 = scmp.lt.s32.totalorder %s395_s21, %s395_s21 }
   0xb   :  { %p402_p6 = por %p401_p5, %p400_p4 }
   0xd   :  { %p403_p7 = pnand %p402_p6, %p396_p3 }
   0xf   :  { %406 = shalt.err (!%p403_p7)
}
  0x10   :  { %s434_s22 = smov 256   ;;  %s435_s23 = smov 16  }
  0x11   :  { %25 = dma.hbm_to_vmem [thread:$0]  %s527_s2, 1792, %s20_s13, [#allocation3], %s434_s22, %s434_s22, %s435_s23  }
  0x12   :  { %429 = dma.done.wait [#allocation3], 1792  }
  0x13   :  { %430 = vsyncadd [#allocation3], 4294965504  ;;  %v436_v0 = vmov 0   ;;  %v437_v1 = vmov 0.0   ;;  %v44_v2 = vld [vmem:[%s525_s0 + $0x8] sm:$0xff]  ;;  %v43_v3 = vld [vmem:[%s525_s0] sm:$0xff]  ;;  %v41_v8 = vlaneseq }
  0x14   :  { %376 = vset.pattern.permute.xlu1 %v436_v0  ;;  %375 = vset.pattern.permute.xlu0 %v436_v0  ;;  %v46_v4 = vld [vmem:[%s525_s0 + $0x18] sm:$0xff]  ;;  %v45_v5 = vld [vmem:[%s525_s0 + $0x10] sm:$0xff]  ;;  %v271_v6 = vld [vmem:[%s526_s1 + $0x8] sm:$0xff]  ;;  %vm141_vm1 = vcmask 457728   ;;  %s438_s0 = smov [#allocation5]  }
  0x15   :  { %218 = vmatprep.mubr.f32.mxu0 %v437_v1  ;;  %230 = vmatprep.mubr.f32.mxu1 %v437_v1  ;;  %v270_v7 = vld [vmem:[%s526_s1] sm:$0xff]  ;;  %377 = vtanh.f32 %v271_v6  ;;  %v273_v9 = vld [vmem:[%s526_s1 + $0x18] sm:$0xff]  ;;  %v272_v10 = vld [vmem:[%s526_s1 + $0x10] sm:$0xff]  ;;  %v92_v24 = vshrl.u32 %v41_v8, 7  ;;  %v42_v37 = vand.u32 127, %v41_v8  ;;  %s327_s1 = sshll.u32 %s438_s0, 4  ;;  %s328_s1 = int_to_ptr.vmem [resolvable:$true] %s327_s1 }
  0x16   :  { %57 = vperm.xlu1 %376, %v44_v2   ;;  %54 = vperm.xlu0 %375, %v43_v3   ;;  %v78_v11 = vld [vmem:[#allocation2 + $0x8] sm:$0xff]  ;;  %379 = vtanh.f32 %v270_v7  ;;  %v80_v12 = vld [vmem:[#allocation2 + $0x18] sm:$0xff]  ;;  %v77_v13 = vld [vmem:[#allocation2] sm:$0xff]  ;;  %s407_s14 = scalar_lea.vmem %s328_s1, 1024  ;;  %p412_p9 = scmp.lt.s32.totalorder %s328_s1, %s328_s1 }
  0x17   :  { %v79_v14 = vld [vmem:[#allocation2 + $0x10] sm:$0xff]  ;;  %381 = vtanh.f32 %v273_v9  ;;  %v349_v15 = vpack.c.bf16 %v80_v12, %v78_v11  ;;  %v82_v17 = vld [vmem:[#allocation2 + $0x28] sm:$0xff]  ;;  %v84_v18 = vld [vmem:[#allocation2 + $0x38] sm:$0xff]  ;;  %v98_v29 = vadd.s32 48, %v92_v24  ;;  %p408_p8 = scmp.ne.s32.totalorder %s328_s1, %s407_s14  ;;  %p413_p10 = scmp.lt.s32.totalorder %s407_s14, %s407_s14 }
  0x18   :  { %v351_v16 = vpack.c.bf16 %v79_v14, %v77_v13  ;;  %v81_v19 = vld [vmem:[#allocation2 + $0x20] sm:$0xff]  ;;  %383 = vtanh.f32 %v272_v10  ;;  %v353_v20 = vpack.c.bf16 %v84_v18, %v82_v17  ;;  %v83_v21 = vld [vmem:[#allocation2 + $0x30] sm:$0xff]  ;;  %v86_v22 = vld [vmem:[#allocation2 + $0x48] sm:$0xff] }
  0x19   :  { %v88_v23 = vld [vmem:[#allocation2 + $0x58] sm:$0xff]  ;;  %350 = vmatprep.subr.bf16.mxu0 %v349_v15  ;;  %361 = vmatprep.subr.bf16.mxu1 %v349_v15  ;;  %v355_v25 = vpack.c.bf16 %v83_v21, %v81_v19  ;;  %v85_v27 = vld [vmem:[#allocation2 + $0x40] sm:$0xff]  ;;  %v87_v28 = vld [vmem:[#allocation2 + $0x50] sm:$0xff]  ;;  %vm112_vm0 = vcmp.lt.s32.totalorder %v98_v29, 50  ;;  %p414_p11 = por %p413_p10, %p412_p9 }
  0x1a   :  { %63 = vperm.xlu1 %376, %v46_v4   ;;  %60 = vperm.xlu0 %375, %v45_v5   ;;  %v357_v26 = vpack.c.bf16 %v88_v23, %v86_v22  ;;  %v359_v30 = vpack.c.bf16 %v87_v28, %v85_v27  ;;  %v90_v33 = vld [vmem:[#allocation2 + $0x68] sm:$0xff]  ;;  %v89_v36 = vld [vmem:[#allocation2 + $0x60] sm:$0xff] }
  0x1b   :  { %352 = vmatpush1.bf16.msra.mxu0 %v351_v16  ;;  %365 = vmatpush1.bf16.msra.mxu1 %v351_v16  ;;  %p415_p12 = pnand %p414_p11, %p408_p8 }
  0x1c   :  { %354 = vmatprep.subr.bf16.mxu0 %v353_v20  ;;  %362 = vmatprep.subr.bf16.mxu1 %v353_v20 }
  0x1f   :  { %356 = vmatpush1.bf16.msra.mxu0 %v355_v25  ;;  %366 = vmatpush1.bf16.msra.mxu1 %v355_v25  ;;  %v378_v31 = vpop.eup %377 }
  0x20   :  { %358 = vmatprep.subr.bf16.mxu0 %v357_v26  ;;  %363 = vmatprep.subr.bf16.mxu1 %v357_v26  ;;  %v380_v32 = vpop.eup %379 }
  0x21   :  { %293 = vperm.xlu1 %376, %v378_v31   ;;  %v382_v34 = vpop.eup %381  ;;  %288 = vperm.xlu0 %375, %v380_v32  }
  0x22   :  { %v384_v35 = vpop.eup %383 }
  0x23   :  { %360 = vmatpush1.bf16.msra.mxu0 %v359_v30  ;;  %367 = vmatpush1.bf16.msra.mxu1 %v359_v30 }
  0x24   :  { %343 = vmatprep.subr.msk.mxu0 %vm112_vm0, %v90_v33  ;;  %364 = vmatprep.subr.msk.mxu1 %vm112_vm0, %v90_v33 }
  0x25   :  { %303 = vperm.xlu1 %376, %v382_v34   ;;  %298 = vperm.xlu0 %375, %v384_v35  }
  0x27   :  { %344 = vmatpush1.msk.msra.mxu0 %vm112_vm0, %v89_v36  ;;  %368 = vmatpush1.msk.msra.mxu1 %vm112_vm0, %v89_v36 }
  0x95   :  { %v58_v38 = vpop.permute.xlu1 %57  ;;  %v55_v39 = vpop.permute.xlu0 %54 }
  0x96   :  { %vm66_vm2 = vcmp.eq.s32.totalorder %v42_v37, %v58_v38  ;;  %vm65_vm3 = vcmp.eq.s32.totalorder %v42_v37, %v55_v39 }
  0x97   :  { %v339_v40 = vsel %vm65_vm3, 1.0, %v437_v1  ;;  %v340_v41 = vsel %vm66_vm2, 1.0, %v437_v1 }
  0x98   :  { %345 = vmatmul.mubr.msk.f32.vlgmr.msra.gmra.mrb[0].mxu0 %vm141_vm1, %v339_v40 }
  0x99   :  { %v64_v42 = vpop.permute.xlu1 %63  ;;  %v61_v43 = vpop.permute.xlu0 %60  ;;  %224 = vmatprep.mubr.f32.mxu0 %v437_v1 }
  0x9a   :  { %vm67_vm4 = vcmp.eq.s32.totalorder %v42_v37, %v61_v43  ;;  %vm68_vm5 = vcmp.eq.s32.totalorder %v42_v37, %v64_v42 }
  0x9b   :  { %v341_v44 = vsel %vm67_vm4, 1.0, %v437_v1  ;;  %v342_v45 = vsel %vm68_vm5, 1.0, %v437_v1 }
  0x9c   :  { %346 = vmatmul.mubr.msk.f32.gmra.mrb[2].mxu0 %vm141_vm1, %v340_v41  ;;  %347 = vmatmul.mubr.msk.f32.vlgmr.msra.gmra.mrb[0].mxu1 %vm141_vm1, %v341_v44 }
  0x9d   :  { %236 = vmatprep.mubr.f32.mxu1 %v437_v1 }
  0xa0   :  { %348 = vmatmul.mubr.msk.f32.gmra.mrb[2].mxu1 %vm141_vm1, %v342_v45  ;;  %v289_v46 = vpop.permute.xlu0 %288  ;;  %v294_v49 = vpop.permute.xlu1 %293 }
  0xa4   :  { %v299_v56 = vpop.permute.xlu0 %298  ;;  %v304_v63 = vpop.permute.xlu1 %303 }
 0x16b   :  { %v220_v47 = vpop.f32.mrb[0].mxu0 }
 0x16c   :  { %v222_v48 = vpop.f32.mrb[1].mxu0  ;;  %v306_v50 = vmul.f32 %v289_v46, %v220_v47 }
 0x16d   :  { %v307_v51 = vmul.f32 %v289_v46, %v222_v48 }
 0x16e   :  { %314 = vst [vmem:[#allocation5] sm:$0xff] %v306_v50 }
 0x16f   :  { %v226_v52 = vpop.f32.mrb[2].mxu0  ;;  %v232_v53 = vpop.f32.mrb[0].mxu1  ;;  %315 = vst [vmem:[#allocation5 + $0x8] sm:$0xff] %v307_v51 }
 0x170   :  { %v228_v54 = vpop.f32.mrb[3].mxu0  ;;  %v234_v55 = vpop.f32.mrb[1].mxu1  ;;  %v308_v57 = vmul.f32 %v294_v49, %v226_v52  ;;  %v310_v58 = vmul.f32 %v299_v56, %v232_v53 }
 0x171   :  { %v309_v59 = vmul.f32 %v294_v49, %v228_v54  ;;  %v311_v60 = vmul.f32 %v299_v56, %v234_v55 }
 0x172   :  { %316 = vst [vmem:[#allocation5 + $0x10] sm:$0xff] %v308_v57  ;;  %318 = vst [vmem:[#allocation5 + $0x20] sm:$0xff] %v310_v58 }
 0x173   :  { %v238_v61 = vpop.f32.mrb[2].mxu1  ;;  %317 = vst [vmem:[#allocation5 + $0x18] sm:$0xff] %v309_v59  ;;  %319 = vst [vmem:[#allocation5 + $0x28] sm:$0xff] %v311_v60 }
 0x174   :  { %v240_v62 = vpop.f32.mrb[3].mxu1  ;;  %v312_v0 = vmul.f32 %v304_v63, %v238_v61 }
 0x175   :  { %v313_v1 = vmul.f32 %v304_v63, %v240_v62 }
 0x176   :  { %320 = vst [vmem:[#allocation5 + $0x30] sm:$0xff] %v312_v0 }
 0x177   :  { %321 = vst [vmem:[#allocation5 + $0x38] sm:$0xff] %v313_v1 }
 0x178   :  { %418 = shalt.err (!%p415_p12)
}
 0x179   :  { %s419_s17 = scalar_lea.hbm %s528_s3, 1024 }
 0x17a   :  { %p420_p13 = scmp.ne.s32.totalorder %s528_s3, %s419_s17  ;;  %p423_p0 = scmp.lt.u32.totalorder %s419_s17, %s528_s3 }
 0x17c   :  { %p425_p1 = pnand %p423_p0, %p420_p13 }
 0x17e   :  { %428 = shalt.err (!%p425_p1)
}
 0x17f   :  { %333 = dma.vmem_to_hbm [thread:$0]  %s328_s1, 1024, %s528_s3, [#allocation4], %s434_s22, %s434_s22, %s435_s23  }
 0x180   :  { %431 = dma.done.wait [#allocation4], 1024  }
 0x181   :  { %432 = vsyncadd [#allocation4], 4294966272 }
 0x182   :  { %337 = vsyncpa [#allocation3], 1 }
 0x183   :  { %338 = vsyncpa [#allocation4], 1 }

</bundles_post_ra>
